<compile_context>
chip_gen: v7x
topology: tpu7x:2x2x1
jax: 0.10.0
libtpu: 0.0.40
codegen_flags: <defaults>
</compile_context>

<pallas_src>
import math

import jax
import jax.numpy as jnp
from jax.experimental import pallas as pl
from jax.experimental.pallas import tpu as pltpu


def _round_up(n, m):
    return ((n + m - 1) // m) * m


def _mlp_kernel(xt_ref, w1_ref, b1_ref, w2_ref, b2_ref, w3_ref, b3_ref, o_ref):
    # xt is (F, tb): batch on lanes (minor), features on sublanes.
    xt = xt_ref[...]                                               # bf16 (F, tb)

    # Layer 1: (32, F) @ (F, tb) -> (32, tb); bf16 operands, f32 MXU accumulate.
    h1 = jnp.dot(w1_ref[...], xt, preferred_element_type=jnp.float32)
    h1 = jnp.maximum(h1 + b1_ref[...], 0.0)                        # f32 VPU epilogue

    # Layer 2: (16, 32) @ (32, tb) -> (16, tb); bf16 operands, f32 accumulate.
    h2 = jnp.dot(w2_ref[...], h1.astype(w2_ref.dtype),
                 preferred_element_type=jnp.float32)
    h2 = jnp.maximum(h2 + b2_ref[...], 0.0)

    # Layer 3 (16 -> 1): tiny contraction; VPU multiply + sublane (XLU) reduce
    # instead of pushing a K=16, N=1 product through the MXU result FIFO.
    out = jnp.sum(h2 * w3_ref[...], axis=0, keepdims=True) + b3_ref[...]   # (1, tb)

    o_ref[...] = out.astype(o_ref.dtype)


def cell_density_nn(x, params, *, batch_tile=32768):
    """Forward pass of CellDensityNN via a fused Pallas kernel.

    x: (B, F) float array
    params: PyTorch-layout parameters:
        w1 (32, F), b1 (32,), w2 (16, 32), b2 (16,), w3 (1, 16), b3 (1,)
    returns: (B, 1) float32
    """
    B, F = x.shape

    # Weights streamed as bf16 for the MXU; f32 for biases / the VPU epilogue.
    w1 = params["w1"].astype(jnp.bfloat16)                    # (32, F)
    w2 = params["w2"].astype(jnp.bfloat16)                    # (16, 32)
    w3 = params["w3"].astype(jnp.float32).T                   # (16, 1) column
    b1 = params["b1"].astype(jnp.float32).reshape(-1, 1)      # (32, 1)
    b2 = params["b2"].astype(jnp.float32).reshape(-1, 1)      # (16, 1)
    b3 = params["b3"].astype(jnp.float32).reshape(1, 1)       # (1, 1)
    H1, H2 = w1.shape[0], w2.shape[0]

    # Lane-aligned batch tile.  Not HBM-bound, so prefer big tiles (amortizes
    # the ~0.35 us per-grid-step overhead); keep >= 2 blocks when possible so
    # the "parallel" grid can be split across v7x TensorCores; never exceed the
    # rounded-up batch.  VMEM per step stays tiny (< 4 MiB even at tb=32768).
    tb = min(int(batch_tile),
             _round_up(max(-(-B // 2), 1), 128),
             _round_up(max(B, 1), 128))
    tb = max(_round_up(tb, 128), 128)

    n_blocks = pl.cdiv(B, tb)
    b_pad = n_blocks * tb

    # Batch-on-lanes: cast + pad + transpose is a single fused XLA layout pass
    # in the wrapper (layout plumbing, not compute).
    xt = x.astype(jnp.bfloat16)
    if b_pad != B:
        xt = jnp.pad(xt, ((0, b_pad - B), (0, 0)))
    xt = xt.T                                                  # (F, b_pad)

    out_t = pl.pallas_call(
        _mlp_kernel,
        out_shape=jax.ShapeDtypeStruct((1, b_pad), jnp.float32),
        grid_spec=pltpu.PrefetchScalarGridSpec(
            num_scalar_prefetch=0,
            grid=(n_blocks,),
            in_specs=[
                # x^T tile: lane-dense (minor dim = tb, multiple of 128).
                # TODO(synk): if a profile ever shows exposed DMA, add
                # pipeline_mode=pl.Buffered(3) here (the tile is tiny in VMEM).
                pl.BlockSpec((F, tb), lambda i: (0, i)),
                # Tiny weights/biases: full blocks, constant index_map -> the
                # pipeline fetches them once and keeps them resident.
                pl.BlockSpec((H1, F), lambda i: (0, 0)),    # w1
                pl.BlockSpec((H1, 1), lambda i: (0, 0)),    # b1
                pl.BlockSpec((H2, H1), lambda i: (0, 0)),   # w2
                pl.BlockSpec((H2, 1), lambda i: (0, 0)),    # b2
                pl.BlockSpec((H2, 1), lambda i: (0, 0)),    # w3 column
                pl.BlockSpec((1, 1), lambda i: (0, 0)),     # b3
            ],
            out_specs=pl.BlockSpec((1, tb), lambda i: (0, i)),   # lane-dense output
        ),
        compiler_params=pltpu.CompilerParams(
            dimension_semantics=("parallel",),        # batch blocks independent
            vmem_limit_bytes=32 * 1024 * 1024,        # safe on v5e/v6e/v7x
        ),
    )(xt, w1, b1, w2, b2, w3, b3)

    # Back to the module's (B, 1) output layout.
    return out_t[:, :B].T


def init_params(key, n_features):
    """nn.Linear default init (uniform +/- 1/sqrt(fan_in)), PyTorch (out, in) layout."""
    dims = [(n_features, 32), (32, 16), (16, 1)]
    params = {}
    for idx, (fan_in, fan_out) in enumerate(dims, start=1):
        key, kw, kb = jax.random.split(key, 3)
        bound = 1.0 / math.sqrt(fan_in)
        params[f"w{idx}"] = jax.random.uniform(
            kw, (fan_out, fan_in), jnp.float32, minval=-bound, maxval=bound)
        params[f"b{idx}"] = jax.random.uniform(
            kb, (fan_out,), jnp.float32, minval=-bound, maxval=bound)
    return params


def _reference(x, p):
    h1 = jnp.maximum(x @ p["w1"].T + p["b1"], 0.0)
    h2 = jnp.maximum(h1 @ p["w2"].T + p["b2"], 0.0)
    return h2 @ p["w3"].T + p["b3"]


if __name__ == "__main__":
    # n_features comes from the CSV in the original script; pick 8 here.
    # Batch is deliberately ragged (not a multiple of the lane tile) to
    # exercise the cdiv + zero-pad tail path; a small explicit tile gives a
    # multi-block "parallel" grid.
    n_features = 8
    batch = 1000

    key = jax.random.PRNGKey(0)
    key, kx = jax.random.split(key)
    x = jax.random.normal(kx, (batch, n_features), dtype=jnp.float32)
    params = init_params(key, n_features)

    out = cell_density_nn(x, params, batch_tile=256)   # 4 grid blocks
    out = jax.block_until_ready(out)

    ref = _reference(x, params)
    assert out.shape == (batch, 1)
    # bf16 inputs with f32 accumulation -> loosened tolerance vs the f32 reference.
    assert jnp.allclose(out, ref, atol=2e-2, rtol=2e-2), float(jnp.max(jnp.abs(out - ref)))

    print("KERNEL_OK")
</pallas_src>

<mosaic_0001>
module attributes {stable_mosaic.version = 11 : i64} {
  func.func @_mlp_kernel(%arg0: i32, %arg1: memref<8x256xbf16, #tpu.memory_space<vmem>>, %arg2: memref<32x8xbf16, #tpu.memory_space<vmem>>, %arg3: memref<32x1xf32, #tpu.memory_space<vmem>>, %arg4: memref<16x32xbf16, #tpu.memory_space<vmem>>, %arg5: memref<16x1xf32, #tpu.memory_space<vmem>>, %arg6: memref<16x1xf32, #tpu.memory_space<vmem>>, %arg7: memref<1x1xf32, #tpu.memory_space<vmem>>, %arg8: memref<1x256xf32, #tpu.memory_space<vmem>>) attributes {dimension_semantics = [#tpu.dimension_semantics<parallel>], iteration_bounds = array<i64: 4>, scalar_prefetch = 0 : i64, scratch_operands = 0 : i64, tpu.core_type = #tpu.core_type<tc>, window_params = [{transform_indices = @transform_0, window_bounds = array<i64: 8, 256>}, {pipeline_mode = #tpu.pipeline_mode<synchronous>, transform_indices = @transform_1, window_bounds = array<i64: 32, 8>}, {pipeline_mode = #tpu.pipeline_mode<synchronous>, transform_indices = @transform_2, window_bounds = array<i64: 32, 1>}, {pipeline_mode = #tpu.pipeline_mode<synchronous>, transform_indices = @transform_3, window_bounds = array<i64: 16, 32>}, {pipeline_mode = #tpu.pipeline_mode<synchronous>, transform_indices = @transform_4, window_bounds = array<i64: 16, 1>}, {pipeline_mode = #tpu.pipeline_mode<synchronous>, transform_indices = @transform_5, window_bounds = array<i64: 16, 1>}, {pipeline_mode = #tpu.pipeline_mode<synchronous>, transform_indices = @transform_6, window_bounds = array<i64: 1, 1>}, {transform_indices = @transform_7, window_bounds = array<i64: 1, 256>}]} {
    %c0 = arith.constant 0 : index
    %c0_0 = arith.constant 0 : index
    %0 = vector.load %arg1[%c0, %c0_0] : memref<8x256xbf16, #tpu.memory_space<vmem>>, vector<8x256xbf16>
    %c0_1 = arith.constant 0 : index
    %c0_2 = arith.constant 0 : index
    %1 = vector.load %arg2[%c0_1, %c0_2] : memref<32x8xbf16, #tpu.memory_space<vmem>>, vector<32x8xbf16>
    %cst = arith.constant dense<0.000000e+00> : vector<32x256xf32>
    %2 = tpu.matmul %1, %0, %cst {dimension_numbers = #tpu.dot_dimension_numbers<[1], [0], [0], [1], [0, 0, 1, 1], [], []>} : vector<32x8xbf16>, vector<8x256xbf16>, vector<32x256xf32> -> vector<32x256xf32>
    %c0_3 = arith.constant 0 : index
    %c0_4 = arith.constant 0 : index
    %3 = vector.load %arg3[%c0_3, %c0_4] : memref<32x1xf32, #tpu.memory_space<vmem>>, vector<32x1xf32>
    %4 = vector.broadcast %3 : vector<32x1xf32> to vector<32x256xf32>
    %5 = arith.addf %2, %4 : vector<32x256xf32>
    %cst_5 = arith.constant 0.000000e+00 : f32
    %6 = vector.broadcast %cst_5 : f32 to vector<32x256xf32>
    %7 = arith.maximumf %5, %6 : vector<32x256xf32>
    %c0_6 = arith.constant 0 : index
    %c0_7 = arith.constant 0 : index
    %8 = vector.load %arg4[%c0_6, %c0_7] : memref<16x32xbf16, #tpu.memory_space<vmem>>, vector<16x32xbf16>
    %9 = arith.truncf %7 : vector<32x256xf32> to vector<32x256xbf16>
    %cst_8 = arith.constant dense<0.000000e+00> : vector<16x256xf32>
    %10 = tpu.matmul %8, %9, %cst_8 {dimension_numbers = #tpu.dot_dimension_numbers<[1], [0], [0], [1], [0, 0, 1, 1], [], []>} : vector<16x32xbf16>, vector<32x256xbf16>, vector<16x256xf32> -> vector<16x256xf32>
    %c0_9 = arith.constant 0 : index
    %c0_10 = arith.constant 0 : index
    %11 = vector.load %arg5[%c0_9, %c0_10] : memref<16x1xf32, #tpu.memory_space<vmem>>, vector<16x1xf32>
    %12 = vector.broadcast %11 : vector<16x1xf32> to vector<16x256xf32>
    %13 = arith.addf %10, %12 : vector<16x256xf32>
    %cst_11 = arith.constant 0.000000e+00 : f32
    %14 = vector.broadcast %cst_11 : f32 to vector<16x256xf32>
    %15 = arith.maximumf %13, %14 : vector<16x256xf32>
    %c0_12 = arith.constant 0 : index
    %c0_13 = arith.constant 0 : index
    %16 = vector.load %arg6[%c0_12, %c0_13] : memref<16x1xf32, #tpu.memory_space<vmem>>, vector<16x1xf32>
    %17 = vector.broadcast %16 : vector<16x1xf32> to vector<16x256xf32>
    %18 = arith.mulf %15, %17 : vector<16x256xf32>
    %cst_14 = arith.constant dense<0.000000e+00> : vector<256xf32>
    %19 = vector.multi_reduction <add>, %18, %cst_14 [0] : vector<16x256xf32> to vector<256xf32>
    %20 = vector.shape_cast %19 : vector<256xf32> to vector<1x256xf32>
    %c0_15 = arith.constant 0 : index
    %c0_16 = arith.constant 0 : index
    %21 = vector.load %arg7[%c0_15, %c0_16] : memref<1x1xf32, #tpu.memory_space<vmem>>, vector<1x1xf32>
    %22 = vector.broadcast %21 : vector<1x1xf32> to vector<1x256xf32>
    %23 = arith.addf %20, %22 : vector<1x256xf32>
    %c0_17 = arith.constant 0 : index
    %c0_18 = arith.constant 0 : index
    %24 = vector.load %arg8[%c0_17, %c0_18] : memref<1x256xf32, #tpu.memory_space<vmem>>, vector<1x256xf32>
    tpu.vector_store %arg8[%c0_17, %c0_18], %23 {strides = array<i32>} : memref<1x256xf32, #tpu.memory_space<vmem>>, vector<1x256xf32>,
    return
  }
  func.func @transform_0(%arg0: i32) -> (i32, i32) {
    %c0_i32 = arith.constant 0 : i32
    %c0_i32_0 = arith.constant 0 : i32
    return %c0_i32, %arg0 : i32, i32
  }
  func.func @transform_1(%arg0: i32) -> (i32, i32) {
    %c0_i32 = arith.constant 0 : i32
    %c0_i32_0 = arith.constant 0 : i32
    %c0_i32_1 = arith.constant 0 : i32
    return %c0_i32, %c0_i32_0 : i32, i32
  }
  func.func @transform_2(%arg0: i32) -> (i32, i32) {
    %c0_i32 = arith.constant 0 : i32
    %c0_i32_0 = arith.constant 0 : i32
    %c0_i32_1 = arith.constant 0 : i32
    return %c0_i32, %c0_i32_0 : i32, i32
  }
  func.func @transform_3(%arg0: i32) -> (i32, i32) {
    %c0_i32 = arith.constant 0 : i32
    %c0_i32_0 = arith.constant 0 : i32
    %c0_i32_1 = arith.constant 0 : i32
    return %c0_i32, %c0_i32_0 : i32, i32
  }
  func.func @transform_4(%arg0: i32) -> (i32, i32) {
    %c0_i32 = arith.constant 0 : i32
    %c0_i32_0 = arith.constant 0 : i32
    %c0_i32_1 = arith.constant 0 : i32
    return %c0_i32, %c0_i32_0 : i32, i32
  }
  func.func @transform_5(%arg0: i32) -> (i32, i32) {
    %c0_i32 = arith.constant 0 : i32
    %c0_i32_0 = arith.constant 0 : i32
    %c0_i32_1 = arith.constant 0 : i32
    return %c0_i32, %c0_i32_0 : i32, i32
  }
  func.func @transform_6(%arg0: i32) -> (i32, i32) {
    %c0_i32 = arith.constant 0 : i32
    %c0_i32_0 = arith.constant 0 : i32
    %c0_i32_1 = arith.constant 0 : i32
    return %c0_i32, %c0_i32_0 : i32, i32
  }
  func.func @transform_7(%arg0: i32) -> (i32, i32) {
    %c0_i32 = arith.constant 0 : i32
    %c0_i32_0 = arith.constant 0 : i32
    return %c0_i32, %arg0 : i32, i32
  }
}

</mosaic_0001>

<bundles_post_ra>
// kernel: tpu_custom_call.1
= control target key start
LH: loop header
LB: loop body
LE: loop exit
PB: predicated region body
PF: predicated region fallthrough
CT: control target
= control target key end

     0   :  { %s927_s0 = inlined_call_operand.vmem [shape: bf16[8,1024], index: 0, kind: input, shape index: {}]   ;;  %s928_s1 = inlined_call_operand.vmem [shape: bf16[32,8], index: 1, kind: input, shape index: {}]   ;;  %s929_s2 = inlined_call_operand.vmem [shape: f32[32,1], index: 2, kind: input, shape index: {}]   ;;  %s930_s3 = inlined_call_operand.vmem [shape: bf16[16,32], index: 3, kind: input, shape index: {}]   ;;  %s931_s4 = inlined_call_operand.vmem [shape: f32[16,1], index: 4, kind: input, shape index: {}]   ;;  %s932_s5 = inlined_call_operand.vmem [shape: f32[16,1], index: 5, kind: input, shape index: {}]   ;;  %s933_s6 = inlined_call_operand.<no memory space> [shape: f32[1,1], index: 6, kind: input, shape index: {}]   ;;  %s934_s7 = inlined_call_operand.hbm [shape: f32[1,1024], index: 7, kind: output, shape index: {}]  }
   0x1   :  { %v12_v0 = vstv %s933_s6 }
   0x2   :  { %13 = vst [vmem:[#allocation2] sm:$0x1] %v12_v0 }
   0x3   :  { %14 = vsyncpa [#allocation4], 0 }
   0x4   :  { %16 = vsyncpa [#allocation4 + $0x1], 0  ;;  %s795_s26 = smov 0   ;;  %s797_s27 = smov 0  }
   0x5   :  { %s799_s28 = smov 0   ;;  %s801_s29 = smov 0  }
   0x6 LB: > { %s816_s6 = sadd.s32 4294967295, %s747_s29   ;;  %s615_s30 = sadd.s32 4294967294, %s747_s29   ;;  %s747_s29 = sphi %s801_s29, %s940_s29   ;;  %s743_s28 = sphi %s799_s28, %s939_s28   ;;  %s739_s27 = sphi %s797_s27, %s938_s27   ;;  %s735_s26 = sphi %s795_s26, %s937_s26  }
   0x7   : > { %s820_s8 = sadd.s32 1, %s747_s29   ;;  %s181_s9 = sadd.s32 1, %s743_s28 }
   0x8   : > { %s178_s10 = ssub.s32 %s747_s29, %s820_s8  ;;  %p191_p0 = scmp.ne.s32.totalorder %s743_s28, %s739_s27 }
   0x9   : > { %p179_p1 = scmp.eq.s32.totalorder %s178_s10, 0  ;;  %p192_p2 = scmp.eq.s32.totalorder %s816_s6, 3 }
   0xa   : > { %p197_p3 = scmp.ne.s32.totalorder %s739_s27, %s735_s26  ;;  %p198_p4 = scmp.eq.s32.totalorder %s615_s30, 3 }
   0xb   : > { %s831_s11 = scalar_select %p179_p1, %s743_s28, %s181_s9  }
   0xc   : > { %p833_p5 = por %p192_p2, %p191_p0  ;;  %p837_p6 = por %p198_p4, %p197_p3 }
   0xd   : > { %p618_p7 = scmp.ge.s32.totalorder %s747_s29, 1  ;;  %p243_p8 = scmp.lt.s32.totalorder %s747_s29, 5 }
   0xf   : > { %p244_p9 = pnand %p618_p7, %p243_p8 }
  0x10   : > { %s620_s14 = sshll.u32 (!%p244_p9), %s816_s6, 1  ;;  %v749_v1 = vmov (!%p244_p9), 0   ;;  %v288_v2 = vld [vmem:[%s929_s2] sm:$0xff] (!%p244_p9)  ;;  %v290_v3 = vld [vmem:[%s929_s2 + $0x10] sm:$0xff] (!%p244_p9)  ;;  %v289_v4 = vld [vmem:[%s929_s2 + $0x8] sm:$0xff] (!%p244_p9)  ;;  %vm334_vm0 = vcmask (!%p244_p9), 1043456  }
  0x11   : > { %247 = sbr.rel (%p244_p9) target bundleno = 524 (0x20c), region = 48  ;;  %p276_p10 = scmp.lt.s32.totalorder (!%p244_p9), %s620_s14, 7  ;;  %373 = vmatprep.mubr.bf16.mxu0 (!%p244_p9), %v749_v1  ;;  %678 = vset.pattern.permute.xlu0 (!%p244_p9), %v749_v1  ;;  %v291_v5 = vld [vmem:[%s929_s2 + $0x18] sm:$0xff] (!%p244_p9)  ;;  %v408_v9 = vld [vmem:[%s931_s4] sm:$0xff] (!%p244_p9)  ;;  %v409_v10 = vld [vmem:[%s931_s4 + $0x8] sm:$0xff] (!%p244_p9)  ;;  %vm327_vm1 = vcmask (!%p244_p9), 64512  }
  0x12   : > { %679 = vset.pattern.permute.xlu1 (!%p244_p9), %v749_v1  ;;  %461 = vmatprep.mubr.bf16.mxu1 (!%p244_p9), %v749_v1  ;;  %v682_v12 = vld [vmem:[%s928_s1] sm:$0xff] (!%p244_p9)   ;;  %v477_v14 = vld [vmem:[%s932_s5 + $0x8] sm:$0xff] (!%p244_p9)  ;;  %vm425_vm2 = vcmask (!%p244_p9), 261120   ;;  %s636_s10 = sshll.u32 (!%p244_p9), %s816_s6, 5  ;;  %s751_s6 = smov (!%p244_p9), [#allocation3]  }
  0x13   : > { %294 = vperm.xlu0 (!%p244_p9), %678, %v288_v2   ;;  %304 = vperm.xlu1 (!%p244_p9), %679, %v290_v3   ;;  %v476_v13 = vld [vmem:[%s932_s5] sm:$0xff] (!%p244_p9)  ;;  %v683_v16 = vld [vmem:[%s928_s1 + $0x8] sm:$0xff] (!%p244_p9)   ;;  %s885_s18 = scalar_lea.hbm (!%p244_p9), %s934_s7, %s636_s10 }
  0x14   : > { %v506_v15 = vld [vmem:[#allocation2] sm:$0x1] (!%p244_p9) }
  0x15   : > { %v684_v49 = vld [vmem:[%s930_s3] sm:$0xff] (!%p244_p9)  }
  0x17   : > { %299 = vperm.xlu0 (!%p244_p9), %678, %v289_v4   ;;  %309 = vperm.xlu1 (!%p244_p9), %679, %v291_v5  }
  0x18   : > { %s942_s14 = smov (!%p276_p10, %s620_s14), 7 }
  0x19   : > { %s621_s21 = sshll.u32 %s942_s14, 2 }
  0x1a   : > { %s279_s30 = scalar_lea.vmem %s927_s0, %s621_s21  ;;  %s689_s21 = sshll.u32 %s751_s6, 4  ;;  %s690_s21 = int_to_ptr.vmem [resolvable:$false] %s689_s21 }
  0x1b   : > { %v283_v6 = vld [vmem:[%s279_s30] sm:$0xff]  ;;  %412 = vperm.xlu0 %678, %v408_v9   ;;  %417 = vperm.xlu1 %679, %v409_v10   ;;  %s272_s30 = sand.u32 1, %s739_s27   ;;  %s691_s22 = scalar_lea.vmem %s690_s21, 64 }
  0x1c   : > { %v625_v7 = vcombine.high %v283_v6, %v283_v6  ;;  %v624_v8 = vcombine.low %v283_v6, %v283_v6  ;;  %v512_v6 = vlaneseq  ;;  %s619_s9 = sshll.u32 %s272_s30, 1  ;;  %s542_s19 = scalar_lea.sflag [#allocation4], %s272_s30 }
  0x1d   : > { %s274_s15 = scalar_lea.vmem [#allocation3], %s619_s9 }
  0x1e   : > { %626 = vmatprep.subr.msk.bf16.mxu0 %vm334_vm0, %v625_v7  ;;  %v336_v11 = vsel %vm334_vm0, %v624_v8, 0  ;;  %s556_s14 = sshll.u32 %s274_s15, 4  ;;  %vm538_vm3 = vcmp.lt.s32.totalorder %v512_v6, 256  ;;  %s887_s14 = int_to_ptr.vmem [resolvable:$true] %s556_s14 }
  0x1f   : > { %342 = vmatpush1.bf16.msra.mxu0 %v336_v11  ;;  %480 = vperm.xlu0 %678, %v476_v13   ;;  %v513_v11 = vshrl.u32 %v512_v6, 7  ;;  %s685_s20 = scalar_lea.vmem %s887_s14, 32  ;;  %p692_p0 = scmp.lt.s32.totalorder %s887_s14, %s690_s21 }
  0x20   : > { %485 = vperm.xlu1 %679, %v477_v14   ;;  %p686_p11 = scmp.ne.s32.totalorder %s887_s14, %s685_s20  ;;  %p693_p1 = scmp.lt.s32.totalorder %s691_s22, %s685_s20 }
  0x22   : > { %627 = vmatmul.mubr.msk.bf16.vlgmr.msra.gmra.mrb[0].mxu0 %vm327_vm1, %v682_v12  ;;  %p687_p12 = pnand %p686_p11, %p833_p5  ;;  %p694_p2 = por %p693_p1, %p692_p0 }
  0x23   : > { %383 = vmatprep.mubr.bf16.mxu0 %v749_v1  ;;  %509 = vperm.xlu0 %678, %v506_v15   ;;  %v750_v15 = vmov 1966171168  }
  0x24   : > { %p688_p13 = pneg %p687_p12 }
  0x26   : > { %p695_p3 = pnand %p694_p2, %p688_p13 }
  0x2a   : > { %628 = vmatmul.mubr.msk.bf16.gmra.mrb[4].mxu0 %vm327_vm1, %v683_v16  ;;  %v522_v16 = vunpack.c.l.s4 %v750_v15 }
  0x92   : > { %v295_v17 = vpop.permute.xlu0 %294  ;;  %v305_v26 = vpop.permute.xlu1 %304 }
  0x96   : > { %v300_v21 = vpop.permute.xlu0 %299  ;;  %v310_v37 = vpop.permute.xlu1 %309 }
  0x9a   : > { %v413_v50 = vpop.permute.xlu0 %412  ;;  %v418_v51 = vpop.permute.xlu1 %417 }
  0x9e   : > { %v481_v63 = vpop.permute.xlu0 %480 }
  0x9f   : > { %v486_v0 = vpop.permute.xlu1 %485 }
  0xf5   : > { %v375_v18 = vpop.f32.mrb[0].mxu0 }
  0xf6   : > { %v376_v19 = vadd.f32 %v375_v18, %v295_v17  ;;  %v377_v20 = vpop.f32.mrb[1].mxu0  ;;  %v514_v18 = vsub.s32 0, %v513_v11 }
  0xf7   : > { %v378_v22 = vadd.f32 %v377_v20, %v295_v17  ;;  %v379_v23 = vpop.f32.mrb[2].mxu0  ;;  %v510_v20 = vpop.permute.xlu0 %509 }
  0xf8   : > { %v380_v24 = vadd.f32 %v379_v23, %v300_v21  ;;  %v381_v25 = vpop.f32.mrb[3].mxu0  ;;  %v394_v28 = vmax.f32 %v376_v19, 0.0  ;;  %v523_v23 = vunpack.c.0.s8 %v522_v16 }
  0xf9   : > { %v382_v27 = vadd.f32 %v381_v25, %v300_v21  ;;  %v395_v30 = vmax.f32 %v378_v22, 0.0  ;;  %v515_v25 = vrot.slane %v510_v20, %v514_v18 }
  0xfa   : > { %v396_v29 = vmax.f32 %v380_v24, 0.0 }
  0xfb   : > { %v397_v31 = vmax.f32 %v382_v27, 0.0 }
  0xfc   : > { %v404_v32 = vpack.c.bf16 %v396_v29, %v394_v28  ;;  %v526_v29 = vsub.s32 %v523_v23, %v513_v11 }
  0xfd   : > { %v385_v33 = vpop.f32.mrb[4].mxu0  ;;  %v405_v34 = vpack.c.bf16 %v397_v31, %v395_v30 }
  0xfe   : > { %v386_v35 = vadd.f32 %v385_v33, %v305_v26  ;;  %v387_v36 = vpop.f32.mrb[5].mxu0 }
  0xff   : > { %v388_v38 = vadd.f32 %v387_v36, %v305_v26  ;;  %v389_v39 = vpop.f32.mrb[6].mxu0  ;;  %429 = vmatprep.subr.bf16.mxu1 %v405_v34 }
 0x100   : > { %v390_v40 = vadd.f32 %v389_v39, %v310_v37  ;;  %v391_v41 = vpop.f32.mrb[7].mxu0  ;;  %430 = vmatpush1.bf16.msra.mxu1 %v404_v32  ;;  %v398_v43 = vmax.f32 %v386_v35, 0.0 }
 0x101   : > { %v392_v42 = vadd.f32 %v391_v41, %v310_v37  ;;  %v399_v45 = vmax.f32 %v388_v38, 0.0 }
 0x102   : > { %v400_v44 = vmax.f32 %v390_v40, 0.0 }
 0x103   : > { %v401_v46 = vmax.f32 %v392_v42, 0.0 }
 0x104   : > { %v406_v47 = vpack.c.bf16 %v400_v44, %v398_v43 }
 0x105   : > { %v407_v48 = vpack.c.bf16 %v401_v46, %v399_v45 }
 0x107   : > { %431 = vmatprep.subr.bf16.mxu1 %v407_v48 }
 0x108   : > { %432 = vmatpush1.bf16.msra.mxu1 %v406_v47 }
 0x10b   : > { %630 = vmatmul.mubr.msk.bf16.vlgmr.msra.gmra.mrb[0].mxu1 %vm425_vm2, %v684_v49 }
 0x1de   : > { %v463_v52 = vpop.f32.mrb[0].mxu1 }
 0x1df   : > { %v464_v53 = vadd.f32 %v463_v52, %v413_v50  ;;  %v465_v54 = vpop.f32.mrb[1].mxu1 }
 0x1e0   : > { %v466_v55 = vadd.f32 %v465_v54, %v413_v50  ;;  %v467_v56 = vpop.f32.mrb[2].mxu1 }
 0x1e1   : > { %v472_v57 = vmax.f32 %v464_v53, 0.0  ;;  %v468_v58 = vadd.f32 %v467_v56, %v418_v51  ;;  %v469_v59 = vpop.f32.mrb[3].mxu1 }
 0x1e2   : > { %v473_v60 = vmax.f32 %v466_v55, 0.0  ;;  %v470_v61 = vadd.f32 %v469_v59, %v418_v51 }
 0x1e3   : > { %v474_v62 = vmax.f32 %v468_v58, 0.0  ;;  %v488_v2 = vmul.f32 %v481_v63, %v472_v57 }
 0x1e4   : > { %v475_v1 = vmax.f32 %v470_v61, 0.0  ;;  %v489_v4 = vmul.f32 %v481_v63, %v473_v60 }
 0x1e5   : > { %v490_v3 = vmul.f32 %v486_v0, %v474_v62 }
 0x1e6   : > { %v491_v5 = vmul.f32 %v486_v0, %v475_v1 }
 0x1e7   : > { %v492_v7 = vadd.f32 %v490_v3, %v488_v2 }
 0x1e8   : > { %v499_v8 = vadd.f32 %v491_v5, %v489_v4 }
 0x1e9   : > { %v493_v9 = vrot.slane %v492_v7, 4 }
 0x1ea   : > { %v500_v10 = vrot.slane %v499_v8, 4 }
 0x1eb   : > { %v494_v12 = vadd.f32 %v493_v9, %v492_v7 }
 0x1ec   : > { %v501_v13 = vadd.f32 %v500_v10, %v499_v8 }
 0x1ed   : > { %v495_v14 = vrot.slane %v494_v12, 2 }
 0x1ee   : > { %v502_v17 = vrot.slane %v501_v13, 2 }
 0x1ef   : > { %v496_v19 = vadd.f32 %v495_v14, %v494_v12 }
 0x1f0   : > { %v503_v21 = vadd.f32 %v502_v17, %v501_v13 }
 0x1f1   : > { %v497_v22 = vrot.slane %v496_v19, 1 }
 0x1f2   : > { %v504_v24 = vrot.slane %v503_v21, 1 }
 0x1f3   : > { %v498_v26 = vadd.f32 %v497_v22, %v496_v19 }
 0x1f4   : > { %v505_v27 = vadd.f32 %v504_v24, %v503_v21 }
 0x1f5   : > { %v516_v28 = vadd.f32 %v515_v25, %v498_v26 }
 0x1f6   : > { %v517_v30 = vadd.f32 %v515_v25, %v505_v27 }
 0x1f8   : > { %v520_v31 = vcombine.low %v516_v28, %v517_v30 }
 0x1fa   : > { %v527_v32 = vrot.slane %v520_v31, %v526_v29 }
 0x1fc   : > { %v534_v33 = vrot.slane %v527_v32, %v526_v29 }
 0x1fe   : > { %540 = vst.msk [vmem:[%s274_s15] sm:$0x3] %vm538_vm3, %v534_v33 }
 0x1ff   : > { %698 = shalt.err (!%p695_p3)
}
 0x200   : > { %s699_s23 = scalar_lea.hbm %s885_s18, 32  ;;  %s703_s30 = scalar_lea.hbm %s934_s7, 128 }
 0x201   : > { %p700_p4 = scmp.ne.s32.totalorder %s885_s18, %s699_s23  ;;  %p704_p9 = scmp.lt.u32.totalorder %s885_s18, %s934_s7 }
 0x202   : > { %p705_p10 = scmp.lt.u32.totalorder %s703_s30, %s699_s23  ;;  %p707_p12 = scmp.lt.u32.totalorder %s699_s23, %s885_s18 }
 0x203   : > { %p701_p7 = pnand %p700_p4, %p833_p5 }
 0x204   : > { %p706_p11 = por %p705_p10, %p704_p9 }
 0x205   : > { %p702_p8 = pneg %p701_p7 }
 0x206   : > { %p708_p13 = por %p707_p12, %p706_p11 }
 0x208   : > { %p709_p0 = pnand %p708_p13, %p702_p8 }
 0x20a   : > { %712 = shalt.err (!%p709_p0)
}
 0x20b   : > { %637 = dma.vmem_to_hbm [thread:$0]  (%p833_p5), %s887_s14, 32, %s885_s18, %s542_s19  }
 0x20c PF: > { %p643_p1 = scmp.ge.s32.totalorder %s747_s29, 2  ;;  %s568_s15 = sand.u32 1, %s735_s26  }
 0x20d   : > { %s569_s16 = scalar_lea.sflag [#allocation4], %s568_s15 }
 0x20e   : > { %p640_p2 = pnand %p643_p1, %p837_p6 }
 0x210   : > { %730 = dma.done.wait (!%p640_p2), %s569_s16, 32  }
 0x211   : > { %732 = vsyncadd (!%p640_p2), %s569_s16, 4294967264  ;;  %p19_p3 = scmp.ge.s32.totalorder %s820_s8, 6   ;;  %s937_s26 = smov %s739_s27 }
 0x212   : > { %s938_s27 = smov %s743_s28  ;;  %s939_s28 = smov %s831_s11 }
 0x213   : > { %s940_s29 = smov %s820_s8  ;;  %21 = sbr.rel (!%p19_p3) target bundleno = 6 (0x6), region = 83 }
 0x21a   :  { %574 = vsyncpa [#allocation4], 1 }
 0x21b   :  { %576 = vsyncpa [#allocation4 + $0x1], 1 }

</bundles_post_ra>
